<compile_context>
chip_gen: v5e
topology: v5e:2x2
jax: 0.10.0
libtpu: 0.0.40
codegen_flags: <defaults>
</compile_context>

<pallas_src>
import functools

import jax
import jax.numpy as jnp
from jax.experimental import pallas as pl
from jax.experimental.pallas import tpu as pltpu


def _resblock_kernel(x_ref, w1_ref, w2_ref, mask_ref, o_ref, *, W, eps):
    """One grid step = one batch sample; the full ResBlock fused on-chip.

    x_ref    : (Cp, HW)    f32 input slab (Cp = channels padded to mult. of 8)
    w1_ref   : (9, Cp, Cp) bf16 conv1 weights, tap-major (ky*3 + kx)
    w2_ref   : (9, Cp, Cp) bf16 conv2 weights
    mask_ref : (9, 1, HW)  f32 {0,1} zero-pad validity mask per 3x3 tap
    o_ref    : (Cp, HW)    f32 output slab
    """
    Cp, HW = x_ref.shape
    x = x_ref[...]                                   # exact f32 (for residual)
    inv_hw = 1.0 / HW

    def conv3x3_in(act, w_taps_ref):
        """3x3 zero-pad conv as 9 shifted MXU matmuls, then InstanceNorm."""
        acc = jnp.zeros((Cp, HW), jnp.float32)
        for t in range(9):
            dy, dx = t // 3 - 1, t % 3 - 1           # tap offsets in {-1,0,1}
            s = dy * W + dx                          # flat source offset
            if s == 0:
                shifted = act
            else:
                # shifted[:, i] = act[:, i + s]; wraparound killed by the mask.
                shifted = pltpu.roll(act, (-s) % HW, 1) * mask_ref[t]
            acc = acc + jnp.dot(w_taps_ref[t], shifted.astype(jnp.bfloat16),
                                preferred_element_type=jnp.float32)
        # InstanceNorm2d (biased variance). Center first, then square, to avoid
        # E[x^2]-E[x]^2 cancellation. rsqrt on the EUP, one multiply/element.
        mean = jnp.sum(acc, axis=-1, keepdims=True) * inv_hw
        cen = acc - mean
        var = jnp.sum(cen * cen, axis=-1, keepdims=True) * inv_hw
        return cen * jax.lax.rsqrt(var + eps)

    y1 = jnp.maximum(conv3x3_in(x, w1_ref), 0.0)     # conv1 + IN + ReLU
    y2 = conv3x3_in(y1, w2_ref)                      # conv2 + IN (y1 never hits HBM)
    o_ref[...] = (y2 + x).astype(o_ref.dtype)        # fused skip connection


def _boundary_masks(H, W):
    """(9, 1, H*W) f32 {0,1}: is each 3x3 tap's source pixel inside the image."""
    r = jnp.repeat(jnp.arange(H), W)
    c = jnp.tile(jnp.arange(W), H)
    masks = []
    for dy in (-1, 0, 1):
        for dx in (-1, 0, 1):
            ok = (r + dy >= 0) & (r + dy < H) & (c + dx >= 0) & (c + dx < W)
            masks.append(ok)
    return jnp.stack(masks).astype(jnp.float32).reshape(9, 1, H * W)


def _conv_weight_taps(w, c_pad):
    """(Cout, Cin, 3, 3) -> (9, Cp, Cp) bf16, tap-major (ky*3 + kx)."""
    cout, cin = w.shape[0], w.shape[1]
    taps = jnp.transpose(w, (2, 3, 0, 1)).reshape(9, cout, cin)
    taps = jnp.pad(taps, ((0, 0), (0, c_pad - cout), (0, c_pad - cin)))
    return taps.astype(jnp.bfloat16)


def _pick_vmem_limit(per_step_bytes):
    """Generation-aware VMEM budget (v7x: 64 MiB physical; v5e/v6e: 128 MiB)."""
    try:
        cap = int(pltpu.get_tpu_info().vmem_capacity_bytes)
    except Exception:
        cap = 64 * 1024 * 1024
    want = 4 * per_step_bytes + (16 << 20)           # double-buffering + headroom
    return int(max(32 << 20, min(want, (cap * 3) // 4)))


def resblock_pallas(x, w1, b1, w2, b2, eps=1e-5):
    """ResBlock forward (norm='in', activation='relu', pad_type='zero').

    b1/b2 are accepted for API parity but dropped: a per-channel constant added
    before InstanceNorm is cancelled exactly by the mean subtraction.
    """
    del b1, b2
    N, C, H, W = x.shape
    HW = H * W
    Cp = ((C + 7) // 8) * 8                          # sublane-aligned channels
    # TODO(synk): for arbitrary H, W also pad HW to a multiple of 128 (lane-dense
    # stores) with mask-aware IN statistics; HW=256 in the demo is already aligned.

    x_slab = x.reshape(N, C, HW)
    if Cp != C:
        x_slab = jnp.pad(x_slab, ((0, 0), (0, Cp - C), (0, 0)))
    w1_t = _conv_weight_taps(w1, Cp)
    w2_t = _conv_weight_taps(w2, Cp)
    masks = _boundary_masks(H, W)

    kernel = functools.partial(_resblock_kernel, W=W, eps=float(eps))

    per_step = (4 * Cp * HW) * 8 + 2 * (w1_t.size + w2_t.size) + 4 * masks.size
    cost = pl.CostEstimate(
        flops=int(N * 2 * 9 * 2 * Cp * Cp * HW + N * 24 * Cp * HW),
        transcendentals=int(2 * N * Cp),
        bytes_accessed=int(8 * N * Cp * HW + 2 * (w1_t.size + w2_t.size)
                           + 4 * masks.size))

    out = pl.pallas_call(
        kernel,
        out_shape=jax.ShapeDtypeStruct((N, Cp, HW), jnp.float32),
        grid_spec=pltpu.PrefetchScalarGridSpec(
            num_scalar_prefetch=0,
            grid=(N,),                               # sample-parallel grid
            in_specs=[
                pl.BlockSpec((None, Cp, HW), lambda i: (i, 0, 0)),  # x slab
                pl.BlockSpec((9, Cp, Cp), lambda i: (0, 0, 0)),     # w1 (resident)
                pl.BlockSpec((9, Cp, Cp), lambda i: (0, 0, 0)),     # w2 (resident)
                pl.BlockSpec((9, 1, HW), lambda i: (0, 0, 0)),      # pad masks
            ],
            out_specs=pl.BlockSpec((None, Cp, HW), lambda i: (i, 0, 0)),
        ),
        compiler_params=pltpu.CompilerParams(
            dimension_semantics=("parallel",),
            vmem_limit_bytes=_pick_vmem_limit(per_step)),
        cost_estimate=cost,
    )(x_slab, w1_t, w2_t, masks)
    # TODO(synk): at production spatial sizes, tile HW with a 1-row halo and
    # scratch partial IN sums so each v7x TensorCore gets >=2 pipelined steps.

    return out[:, :C, :].reshape(N, C, H, W)


def resblock_ref(x, w1, b1, w2, b2, eps=1e-5):
    """Pure-JAX reference mirroring the PyTorch ResBlock forward."""
    def conv3x3(h, w, b):
        y = jax.lax.conv_general_dilated(
            h, w, window_strides=(1, 1), padding=((1, 1), (1, 1)),
            dimension_numbers=("NCHW", "OIHW", "NCHW"))
        return y + b.reshape(1, -1, 1, 1)

    def instance_norm(y):
        mean = jnp.mean(y, axis=(2, 3), keepdims=True)
        var = jnp.var(y, axis=(2, 3), keepdims=True)  # biased, like InstanceNorm2d
        return (y - mean) / jnp.sqrt(var + eps)

    h = jnp.maximum(instance_norm(conv3x3(x, w1, b1)), 0.0)
    h = instance_norm(conv3x3(h, w2, b2))
    return h + x


if __name__ == "__main__":
    key = jax.random.PRNGKey(0)
    kx, k1, k2, k3, k4 = jax.random.split(key, 5)

    N, C, H, W = 2, 4, 16, 16
    x = jax.random.normal(kx, (N, C, H, W), dtype=jnp.float32)
    w1 = 0.2 * jax.random.normal(k1, (C, C, 3, 3), dtype=jnp.float32)
    b1 = 0.1 * jax.random.normal(k2, (C,), dtype=jnp.float32)
    w2 = 0.2 * jax.random.normal(k3, (C, C, 3, 3), dtype=jnp.float32)
    b2 = 0.1 * jax.random.normal(k4, (C,), dtype=jnp.float32)

    out = jax.jit(resblock_pallas)(x, w1, b1, w2, b2)
    out = jax.block_until_ready(out)

    ref = resblock_ref(x, w1, b1, w2, b2)
    assert out.shape == ref.shape
    # bf16 MXU inputs (f32 accumulation) -> tolerance sized for bf16 convs.
    assert bool(jnp.allclose(out, ref, atol=5e-2, rtol=5e-2)), "mismatch vs reference"

    print("KERNEL_OK")
</pallas_src>

<mosaic_0001>
module attributes {stable_mosaic.version = 11 : i64} {
  func.func @_resblock_kernel(%arg0: i32, %arg1: memref<1x8x256xf32, #tpu.memory_space<vmem>>, %arg2: memref<9x8x8xbf16, #tpu.memory_space<vmem>>, %arg3: memref<9x8x8xbf16, #tpu.memory_space<vmem>>, %arg4: memref<9x1x256xf32, #tpu.memory_space<vmem>>, %arg5: memref<1x8x256xf32, #tpu.memory_space<vmem>>) attributes {dimension_semantics = [#tpu.dimension_semantics<parallel>], iteration_bounds = array<i64: 2>, scalar_prefetch = 0 : i64, scratch_operands = 0 : i64, tpu.core_type = #tpu.core_type<tc>, window_params = [{transform_indices = @transform_0, window_bounds = array<i64: 1, 8, 256>}, {pipeline_mode = #tpu.pipeline_mode<synchronous>, transform_indices = @transform_1, window_bounds = array<i64: 9, 8, 8>}, {pipeline_mode = #tpu.pipeline_mode<synchronous>, transform_indices = @transform_2, window_bounds = array<i64: 9, 8, 8>}, {pipeline_mode = #tpu.pipeline_mode<synchronous>, transform_indices = @transform_3, window_bounds = array<i64: 9, 1, 256>}, {transform_indices = @transform_4, window_bounds = array<i64: 1, 8, 256>}]} {
    %c0 = arith.constant 0 : index
    %c0_0 = arith.constant 0 : index
    %c0_1 = arith.constant 0 : index
    %0 = vector.load %arg1[%c0, %c0_0, %c0_1] : memref<1x8x256xf32, #tpu.memory_space<vmem>>, vector<1x8x256xf32>
    %1 = vector.shape_cast %0 : vector<1x8x256xf32> to vector<8x256xf32>
    %cst = arith.constant 0.000000e+00 : f32
    %2 = vector.broadcast %cst : f32 to vector<8x256xf32>
    %c17_i32 = arith.constant 17 : i32
    %3 = tpu.dynamic_rotate %1 by %c17_i32 dim 1 : vector<8x256xf32>, i32 -> vector<8x256xf32>
    %c0_2 = arith.constant 0 : index
    %c0_3 = arith.constant 0 : index
    %c0_4 = arith.constant 0 : index
    %4 = vector.load %arg4[%c0_2, %c0_3, %c0_4] : memref<9x1x256xf32, #tpu.memory_space<vmem>>, vector<1x1x256xf32>
    %5 = vector.shape_cast %4 : vector<1x1x256xf32> to vector<1x256xf32>
    %6 = vector.broadcast %5 : vector<1x256xf32> to vector<8x256xf32>
    %7 = arith.mulf %3, %6 : vector<8x256xf32>
    %c0_5 = arith.constant 0 : index
    %c0_6 = arith.constant 0 : index
    %c0_7 = arith.constant 0 : index
    %8 = vector.load %arg2[%c0_5, %c0_6, %c0_7] : memref<9x8x8xbf16, #tpu.memory_space<vmem>>, vector<1x8x8xbf16>
    %9 = vector.shape_cast %8 : vector<1x8x8xbf16> to vector<8x8xbf16>
    %10 = arith.truncf %7 : vector<8x256xf32> to vector<8x256xbf16>
    %cst_8 = arith.constant dense<0.000000e+00> : vector<8x256xf32>
    %11 = tpu.matmul %9, %10, %cst_8 {dimension_numbers = #tpu.dot_dimension_numbers<[1], [0], [0], [1], [0, 0, 1, 1], [], []>} : vector<8x8xbf16>, vector<8x256xbf16>, vector<8x256xf32> -> vector<8x256xf32>
    %12 = arith.addf %2, %11 : vector<8x256xf32>
    %c16_i32 = arith.constant 16 : i32
    %13 = tpu.dynamic_rotate %1 by %c16_i32 dim 1 : vector<8x256xf32>, i32 -> vector<8x256xf32>
    %c1 = arith.constant 1 : index
    %c0_9 = arith.constant 0 : index
    %c0_10 = arith.constant 0 : index
    %14 = vector.load %arg4[%c1, %c0_9, %c0_10] : memref<9x1x256xf32, #tpu.memory_space<vmem>>, vector<1x1x256xf32>
    %15 = vector.shape_cast %14 : vector<1x1x256xf32> to vector<1x256xf32>
    %16 = vector.broadcast %15 : vector<1x256xf32> to vector<8x256xf32>
    %17 = arith.mulf %13, %16 : vector<8x256xf32>
    %c1_11 = arith.constant 1 : index
    %c0_12 = arith.constant 0 : index
    %c0_13 = arith.constant 0 : index
    %18 = vector.load %arg2[%c1_11, %c0_12, %c0_13] : memref<9x8x8xbf16, #tpu.memory_space<vmem>>, vector<1x8x8xbf16>
    %19 = vector.shape_cast %18 : vector<1x8x8xbf16> to vector<8x8xbf16>
    %20 = arith.truncf %17 : vector<8x256xf32> to vector<8x256xbf16>
    %cst_14 = arith.constant dense<0.000000e+00> : vector<8x256xf32>
    %21 = tpu.matmul %19, %20, %cst_14 {dimension_numbers = #tpu.dot_dimension_numbers<[1], [0], [0], [1], [0, 0, 1, 1], [], []>} : vector<8x8xbf16>, vector<8x256xbf16>, vector<8x256xf32> -> vector<8x256xf32>
    %22 = arith.addf %12, %21 : vector<8x256xf32>
    %c15_i32 = arith.constant 15 : i32
    %23 = tpu.dynamic_rotate %1 by %c15_i32 dim 1 : vector<8x256xf32>, i32 -> vector<8x256xf32>
    %c2 = arith.constant 2 : index
    %c0_15 = arith.constant 0 : index
    %c0_16 = arith.constant 0 : index
    %24 = vector.load %arg4[%c2, %c0_15, %c0_16] : memref<9x1x256xf32, #tpu.memory_space<vmem>>, vector<1x1x256xf32>
    %25 = vector.shape_cast %24 : vector<1x1x256xf32> to vector<1x256xf32>
    %26 = vector.broadcast %25 : vector<1x256xf32> to vector<8x256xf32>
    %27 = arith.mulf %23, %26 : vector<8x256xf32>
    %c2_17 = arith.constant 2 : index
    %c0_18 = arith.constant 0 : index
    %c0_19 = arith.constant 0 : index
    %28 = vector.load %arg2[%c2_17, %c0_18, %c0_19] : memref<9x8x8xbf16, #tpu.memory_space<vmem>>, vector<1x8x8xbf16>
    %29 = vector.shape_cast %28 : vector<1x8x8xbf16> to vector<8x8xbf16>
    %30 = arith.truncf %27 : vector<8x256xf32> to vector<8x256xbf16>
    %cst_20 = arith.constant dense<0.000000e+00> : vector<8x256xf32>
    %31 = tpu.matmul %29, %30, %cst_20 {dimension_numbers = #tpu.dot_dimension_numbers<[1], [0], [0], [1], [0, 0, 1, 1], [], []>} : vector<8x8xbf16>, vector<8x256xbf16>, vector<8x256xf32> -> vector<8x256xf32>
    %32 = arith.addf %22, %31 : vector<8x256xf32>
    %c1_i32 = arith.constant 1 : i32
    %33 = tpu.dynamic_rotate %1 by %c1_i32 dim 1 : vector<8x256xf32>, i32 -> vector<8x256xf32>
    %c3 = arith.constant 3 : index
    %c0_21 = arith.constant 0 : index
    %c0_22 = arith.constant 0 : index
    %34 = vector.load %arg4[%c3, %c0_21, %c0_22] : memref<9x1x256xf32, #tpu.memory_space<vmem>>, vector<1x1x256xf32>
    %35 = vector.shape_cast %34 : vector<1x1x256xf32> to vector<1x256xf32>
    %36 = vector.broadcast %35 : vector<1x256xf32> to vector<8x256xf32>
    %37 = arith.mulf %33, %36 : vector<8x256xf32>
    %c3_23 = arith.constant 3 : index
    %c0_24 = arith.constant 0 : index
    %c0_25 = arith.constant 0 : index
    %38 = vector.load %arg2[%c3_23, %c0_24, %c0_25] : memref<9x8x8xbf16, #tpu.memory_space<vmem>>, vector<1x8x8xbf16>
    %39 = vector.shape_cast %38 : vector<1x8x8xbf16> to vector<8x8xbf16>
    %40 = arith.truncf %37 : vector<8x256xf32> to vector<8x256xbf16>
    %cst_26 = arith.constant dense<0.000000e+00> : vector<8x256xf32>
    %41 = tpu.matmul %39, %40, %cst_26 {dimension_numbers = #tpu.dot_dimension_numbers<[1], [0], [0], [1], [0, 0, 1, 1], [], []>} : vector<8x8xbf16>, vector<8x256xbf16>, vector<8x256xf32> -> vector<8x256xf32>
    %42 = arith.addf %32, %41 : vector<8x256xf32>
    %c4 = arith.constant 4 : index
    %c0_27 = arith.constant 0 : index
    %c0_28 = arith.constant 0 : index
    %43 = vector.load %arg2[%c4, %c0_27, %c0_28] : memref<9x8x8xbf16, #tpu.memory_space<vmem>>, vector<1x8x8xbf16>
    %44 = vector.shape_cast %43 : vector<1x8x8xbf16> to vector<8x8xbf16>
    %45 = arith.truncf %1 : vector<8x256xf32> to vector<8x256xbf16>
    %cst_29 = arith.constant dense<0.000000e+00> : vector<8x256xf32>
    %46 = tpu.matmul %44, %45, %cst_29 {dimension_numbers = #tpu.dot_dimension_numbers<[1], [0], [0], [1], [0, 0, 1, 1], [], []>} : vector<8x8xbf16>, vector<8x256xbf16>, vector<8x256xf32> -> vector<8x256xf32>
    %47 = arith.addf %42, %46 : vector<8x256xf32>
    %c255_i32 = arith.constant 255 : i32
    %48 = tpu.dynamic_rotate %1 by %c255_i32 dim 1 : vector<8x256xf32>, i32 -> vector<8x256xf32>
    %c5 = arith.constant 5 : index
    %c0_30 = arith.constant 0 : index
    %c0_31 = arith.constant 0 : index
    %49 = vector.load %arg4[%c5, %c0_30, %c0_31] : memref<9x1x256xf32, #tpu.memory_space<vmem>>, vector<1x1x256xf32>
    %50 = vector.shape_cast %49 : vector<1x1x256xf32> to vector<1x256xf32>
    %51 = vector.broadcast %50 : vector<1x256xf32> to vector<8x256xf32>
    %52 = arith.mulf %48, %51 : vector<8x256xf32>
    %c5_32 = arith.constant 5 : index
    %c0_33 = arith.constant 0 : index
    %c0_34 = arith.constant 0 : index
    %53 = vector.load %arg2[%c5_32, %c0_33, %c0_34] : memref<9x8x8xbf16, #tpu.memory_space<vmem>>, vector<1x8x8xbf16>
    %54 = vector.shape_cast %53 : vector<1x8x8xbf16> to vector<8x8xbf16>
    %55 = arith.truncf %52 : vector<8x256xf32> to vector<8x256xbf16>
    %cst_35 = arith.constant dense<0.000000e+00> : vector<8x256xf32>
    %56 = tpu.matmul %54, %55, %cst_35 {dimension_numbers = #tpu.dot_dimension_numbers<[1], [0], [0], [1], [0, 0, 1, 1], [], []>} : vector<8x8xbf16>, vector<8x256xbf16>, vector<8x256xf32> -> vector<8x256xf32>
    %57 = arith.addf %47, %56 : vector<8x256xf32>
    %c241_i32 = arith.constant 241 : i32
    %58 = tpu.dynamic_rotate %1 by %c241_i32 dim 1 : vector<8x256xf32>, i32 -> vector<8x256xf32>
    %c6 = arith.constant 6 : index
    %c0_36 = arith.constant 0 : index
    %c0_37 = arith.constant 0 : index
    %59 = vector.load %arg4[%c6, %c0_36, %c0_37] : memref<9x1x256xf32, #tpu.memory_space<vmem>>, vector<1x1x256xf32>
    %60 = vector.shape_cast %59 : vector<1x1x256xf32> to vector<1x256xf32>
    %61 = vector.broadcast %60 : vector<1x256xf32> to vector<8x256xf32>
    %62 = arith.mulf %58, %61 : vector<8x256xf32>
    %c6_38 = arith.constant 6 : index
    %c0_39 = arith.constant 0 : index
    %c0_40 = arith.constant 0 : index
    %63 = vector.load %arg2[%c6_38, %c0_39, %c0_40] : memref<9x8x8xbf16, #tpu.memory_space<vmem>>, vector<1x8x8xbf16>
    %64 = vector.shape_cast %63 : vector<1x8x8xbf16> to vector<8x8xbf16>
    %65 = arith.truncf %62 : vector<8x256xf32> to vector<8x256xbf16>
    %cst_41 = arith.constant dense<0.000000e+00> : vector<8x256xf32>
    %66 = tpu.matmul %64, %65, %cst_41 {dimension_numbers = #tpu.dot_dimension_numbers<[1], [0], [0], [1], [0, 0, 1, 1], [], []>} : vector<8x8xbf16>, vector<8x256xbf16>, vector<8x256xf32> -> vector<8x256xf32>
    %67 = arith.addf %57, %66 : vector<8x256xf32>
    %c240_i32 = arith.constant 240 : i32
    %68 = tpu.dynamic_rotate %1 by %c240_i32 dim 1 : vector<8x256xf32>, i32 -> vector<8x256xf32>
    %c7 = arith.constant 7 : index
    %c0_42 = arith.constant 0 : index
    %c0_43 = arith.constant 0 : index
    %69 = vector.load %arg4[%c7, %c0_42, %c0_43] : memref<9x1x256xf32, #tpu.memory_space<vmem>>, vector<1x1x256xf32>
    %70 = vector.shape_cast %69 : vector<1x1x256xf32> to vector<1x256xf32>
    %71 = vector.broadcast %70 : vector<1x256xf32> to vector<8x256xf32>
    %72 = arith.mulf %68, %71 : vector<8x256xf32>
    %c7_44 = arith.constant 7 : index
    %c0_45 = arith.constant 0 : index
    %c0_46 = arith.constant 0 : index
    %73 = vector.load %arg2[%c7_44, %c0_45, %c0_46] : memref<9x8x8xbf16, #tpu.memory_space<vmem>>, vector<1x8x8xbf16>
    %74 = vector.shape_cast %73 : vector<1x8x8xbf16> to vector<8x8xbf16>
    %75 = arith.truncf %72 : vector<8x256xf32> to vector<8x256xbf16>
    %cst_47 = arith.constant dense<0.000000e+00> : vector<8x256xf32>
    %76 = tpu.matmul %74, %75, %cst_47 {dimension_numbers = #tpu.dot_dimension_numbers<[1], [0], [0], [1], [0, 0, 1, 1], [], []>} : vector<8x8xbf16>, vector<8x256xbf16>, vector<8x256xf32> -> vector<8x256xf32>
    %77 = arith.addf %67, %76 : vector<8x256xf32>
    %c239_i32 = arith.constant 239 : i32
    %78 = tpu.dynamic_rotate %1 by %c239_i32 dim 1 : vector<8x256xf32>, i32 -> vector<8x256xf32>
    %c8 = arith.constant 8 : index
    %c0_48 = arith.constant 0 : index
    %c0_49 = arith.constant 0 : index
    %79 = vector.load %arg4[%c8, %c0_48, %c0_49] : memref<9x1x256xf32, #tpu.memory_space<vmem>>, vector<1x1x256xf32>
    %80 = vector.shape_cast %79 : vector<1x1x256xf32> to vector<1x256xf32>
    %81 = vector.broadcast %80 : vector<1x256xf32> to vector<8x256xf32>
    %82 = arith.mulf %78, %81 : vector<8x256xf32>
    %c8_50 = arith.constant 8 : index
    %c0_51 = arith.constant 0 : index
    %c0_52 = arith.constant 0 : index
    %83 = vector.load %arg2[%c8_50, %c0_51, %c0_52] : memref<9x8x8xbf16, #tpu.memory_space<vmem>>, vector<1x8x8xbf16>
    %84 = vector.shape_cast %83 : vector<1x8x8xbf16> to vector<8x8xbf16>
    %85 = arith.truncf %82 : vector<8x256xf32> to vector<8x256xbf16>
    %cst_53 = arith.constant dense<0.000000e+00> : vector<8x256xf32>
    %86 = tpu.matmul %84, %85, %cst_53 {dimension_numbers = #tpu.dot_dimension_numbers<[1], [0], [0], [1], [0, 0, 1, 1], [], []>} : vector<8x8xbf16>, vector<8x256xbf16>, vector<8x256xf32> -> vector<8x256xf32>
    %87 = arith.addf %77, %86 : vector<8x256xf32>
    %cst_54 = arith.constant dense<0.000000e+00> : vector<8xf32>
    %88 = vector.multi_reduction <add>, %87, %cst_54 [1] : vector<8x256xf32> to vector<8xf32>
    %89 = vector.shape_cast %88 : vector<8xf32> to vector<8x1xf32>
    %cst_55 = arith.constant 3.906250e-03 : f32
    %90 = vector.broadcast %cst_55 : f32 to vector<8x1xf32>
    %91 = arith.mulf %89, %90 : vector<8x1xf32>
    %92 = vector.broadcast %91 : vector<8x1xf32> to vector<8x256xf32>
    %93 = arith.subf %87, %92 : vector<8x256xf32>
    %94 = arith.mulf %93, %93 : vector<8x256xf32>
    %cst_56 = arith.constant dense<0.000000e+00> : vector<8xf32>
    %95 = vector.multi_reduction <add>, %94, %cst_56 [1] : vector<8x256xf32> to vector<8xf32>
    %96 = vector.shape_cast %95 : vector<8xf32> to vector<8x1xf32>
    %cst_57 = arith.constant 3.906250e-03 : f32
    %97 = vector.broadcast %cst_57 : f32 to vector<8x1xf32>
    %98 = arith.mulf %96, %97 : vector<8x1xf32>
    %cst_58 = arith.constant 9.99999974E-6 : f32
    %99 = vector.broadcast %cst_58 : f32 to vector<8x1xf32>
    %100 = arith.addf %98, %99 : vector<8x1xf32>
    %101 = math.rsqrt %100 : vector<8x1xf32>
    %102 = vector.broadcast %101 : vector<8x1xf32> to vector<8x256xf32>
    %103 = arith.mulf %93, %102 : vector<8x256xf32>
    %cst_59 = arith.constant 0.000000e+00 : f32
    %104 = vector.broadcast %cst_59 : f32 to vector<8x256xf32>
    %105 = arith.maximumf %103, %104 : vector<8x256xf32>
    %cst_60 = arith.constant 0.000000e+00 : f32
    %106 = vector.broadcast %cst_60 : f32 to vector<8x256xf32>
    %c17_i32_61 = arith.constant 17 : i32
    %107 = tpu.dynamic_rotate %105 by %c17_i32_61 dim 1 : vector<8x256xf32>, i32 -> vector<8x256xf32>
    %c0_62 = arith.constant 0 : index
    %c0_63 = arith.constant 0 : index
    %c0_64 = arith.constant 0 : index
    %108 = vector.load %arg4[%c0_62, %c0_63, %c0_64] : memref<9x1x256xf32, #tpu.memory_space<vmem>>, vector<1x1x256xf32>
    %109 = vector.shape_cast %108 : vector<1x1x256xf32> to vector<1x256xf32>
    %110 = vector.broadcast %109 : vector<1x256xf32> to vector<8x256xf32>
    %111 = arith.mulf %107, %110 : vector<8x256xf32>
    %c0_65 = arith.constant 0 : index
    %c0_66 = arith.constant 0 : index
    %c0_67 = arith.constant 0 : index
    %112 = vector.load %arg3[%c0_65, %c0_66, %c0_67] : memref<9x8x8xbf16, #tpu.memory_space<vmem>>, vector<1x8x8xbf16>
    %113 = vector.shape_cast %112 : vector<1x8x8xbf16> to vector<8x8xbf16>
    %114 = arith.truncf %111 : vector<8x256xf32> to vector<8x256xbf16>
    %cst_68 = arith.constant dense<0.000000e+00> : vector<8x256xf32>
    %115 = tpu.matmul %113, %114, %cst_68 {dimension_numbers = #tpu.dot_dimension_numbers<[1], [0], [0], [1], [0, 0, 1, 1], [], []>} : vector<8x8xbf16>, vector<8x256xbf16>, vector<8x256xf32> -> vector<8x256xf32>
    %116 = arith.addf %106, %115 : vector<8x256xf32>
    %c16_i32_69 = arith.constant 16 : i32
    %117 = tpu.dynamic_rotate %105 by %c16_i32_69 dim 1 : vector<8x256xf32>, i32 -> vector<8x256xf32>
    %c1_70 = arith.constant 1 : index
    %c0_71 = arith.constant 0 : index
    %c0_72 = arith.constant 0 : index
    %118 = vector.load %arg4[%c1_70, %c0_71, %c0_72] : memref<9x1x256xf32, #tpu.memory_space<vmem>>, vector<1x1x256xf32>
    %119 = vector.shape_cast %118 : vector<1x1x256xf32> to vector<1x256xf32>
    %120 = vector.broadcast %119 : vector<1x256xf32> to vector<8x256xf32>
    %121 = arith.mulf %117, %120 : vector<8x256xf32>
    %c1_73 = arith.constant 1 : index
    %c0_74 = arith.constant 0 : index
    %c0_75 = arith.constant 0 : index
    %122 = vector.load %arg3[%c1_73, %c0_74, %c0_75] : memref<9x8x8xbf16, #tpu.memory_space<vmem>>, vector<1x8x8xbf16>
    %123 = vector.shape_cast %122 : vector<1x8x8xbf16> to vector<8x8xbf16>
    %124 = arith.truncf %121 : vector<8x256xf32> to vector<8x256xbf16>
    %cst_76 = arith.constant dense<0.000000e+00> : vector<8x256xf32>
    %125 = tpu.matmul %123, %124, %cst_76 {dimension_numbers = #tpu.dot_dimension_numbers<[1], [0], [0], [1], [0, 0, 1, 1], [], []>} : vector<8x8xbf16>, vector<8x256xbf16>, vector<8x256xf32> -> vector<8x256xf32>
    %126 = arith.addf %116, %125 : vector<8x256xf32>
    %c15_i32_77 = arith.constant 15 : i32
    %127 = tpu.dynamic_rotate %105 by %c15_i32_77 dim 1 : vector<8x256xf32>, i32 -> vector<8x256xf32>
    %c2_78 = arith.constant 2 : index
    %c0_79 = arith.constant 0 : index
    %c0_80 = arith.constant 0 : index
    %128 = vector.load %arg4[%c2_78, %c0_79, %c0_80] : memref<9x1x256xf32, #tpu.memory_space<vmem>>, vector<1x1x256xf32>
    %129 = vector.shape_cast %128 : vector<1x1x256xf32> to vector<1x256xf32>
    %130 = vector.broadcast %129 : vector<1x256xf32> to vector<8x256xf32>
    %131 = arith.mulf %127, %130 : vector<8x256xf32>
    %c2_81 = arith.constant 2 : index
    %c0_82 = arith.constant 0 : index
    %c0_83 = arith.constant 0 : index
    %132 = vector.load %arg3[%c2_81, %c0_82, %c0_83] : memref<9x8x8xbf16, #tpu.memory_space<vmem>>, vector<1x8x8xbf16>
    %133 = vector.shape_cast %132 : vector<1x8x8xbf16> to vector<8x8xbf16>
    %134 = arith.truncf %131 : vector<8x256xf32> to vector<8x256xbf16>
    %cst_84 = arith.constant dense<0.000000e+00> : vector<8x256xf32>
    %135 = tpu.matmul %133, %134, %cst_84 {dimension_numbers = #tpu.dot_dimension_numbers<[1], [0], [0], [1], [0, 0, 1, 1], [], []>} : vector<8x8xbf16>, vector<8x256xbf16>, vector<8x256xf32> -> vector<8x256xf32>
    %136 = arith.addf %126, %135 : vector<8x256xf32>
    %c1_i32_85 = arith.constant 1 : i32
    %137 = tpu.dynamic_rotate %105 by %c1_i32_85 dim 1 : vector<8x256xf32>, i32 -> vector<8x256xf32>
    %c3_86 = arith.constant 3 : index
    %c0_87 = arith.constant 0 : index
    %c0_88 = arith.constant 0 : index
    %138 = vector.load %arg4[%c3_86, %c0_87, %c0_88] : memref<9x1x256xf32, #tpu.memory_space<vmem>>, vector<1x1x256xf32>
    %139 = vector.shape_cast %138 : vector<1x1x256xf32> to vector<1x256xf32>
    %140 = vector.broadcast %139 : vector<1x256xf32> to vector<8x256xf32>
    %141 = arith.mulf %137, %140 : vector<8x256xf32>
    %c3_89 = arith.constant 3 : index
    %c0_90 = arith.constant 0 : index
    %c0_91 = arith.constant 0 : index
    %142 = vector.load %arg3[%c3_89, %c0_90, %c0_91] : memref<9x8x8xbf16, #tpu.memory_space<vmem>>, vector<1x8x8xbf16>
    %143 = vector.shape_cast %142 : vector<1x8x8xbf16> to vector<8x8xbf16>
    %144 = arith.truncf %141 : vector<8x256xf32> to vector<8x256xbf16>
    %cst_92 = arith.constant dense<0.000000e+00> : vector<8x256xf32>
    %145 = tpu.matmul %143, %144, %cst_92 {dimension_numbers = #tpu.dot_dimension_numbers<[1], [0], [0], [1], [0, 0, 1, 1], [], []>} : vector<8x8xbf16>, vector<8x256xbf16>, vector<8x256xf32> -> vector<8x256xf32>
    %146 = arith.addf %136, %145 : vector<8x256xf32>
    %c4_93 = arith.constant 4 : index
    %c0_94 = arith.constant 0 : index
    %c0_95 = arith.constant 0 : index
    %147 = vector.load %arg3[%c4_93, %c0_94, %c0_95] : memref<9x8x8xbf16, #tpu.memory_space<vmem>>, vector<1x8x8xbf16>
    %148 = vector.shape_cast %147 : vector<1x8x8xbf16> to vector<8x8xbf16>
    %149 = arith.truncf %105 : vector<8x256xf32> to vector<8x256xbf16>
    %cst_96 = arith.constant dense<0.000000e+00> : vector<8x256xf32>
    %150 = tpu.matmul %148, %149, %cst_96 {dimension_numbers = #tpu.dot_dimension_numbers<[1], [0], [0], [1], [0, 0, 1, 1], [], []>} : vector<8x8xbf16>, vector<8x256xbf16>, vector<8x256xf32> -> vector<8x256xf32>
    %151 = arith.addf %146, %150 : vector<8x256xf32>
    %c255_i32_97 = arith.constant 255 : i32
    %152 = tpu.dynamic_rotate %105 by %c255_i32_97 dim 1 : vector<8x256xf32>, i32 -> vector<8x256xf32>
    %c5_98 = arith.constant 5 : index
    %c0_99 = arith.constant 0 : index
    %c0_100 = arith.constant 0 : index
    %153 = vector.load %arg4[%c5_98, %c0_99, %c0_100] : memref<9x1x256xf32, #tpu.memory_space<vmem>>, vector<1x1x256xf32>
    %154 = vector.shape_cast %153 : vector<1x1x256xf32> to vector<1x256xf32>
    %155 = vector.broadcast %154 : vector<1x256xf32> to vector<8x256xf32>
    %156 = arith.mulf %152, %155 : vector<8x256xf32>
    %c5_101 = arith.constant 5 : index
    %c0_102 = arith.constant 0 : index
    %c0_103 = arith.constant 0 : index
    %157 = vector.load %arg3[%c5_101, %c0_102, %c0_103] : memref<9x8x8xbf16, #tpu.memory_space<vmem>>, vector<1x8x8xbf16>
    %158 = vector.shape_cast %157 : vector<1x8x8xbf16> to vector<8x8xbf16>
    %159 = arith.truncf %156 : vector<8x256xf32> to vector<8x256xbf16>
    %cst_104 = arith.constant dense<0.000000e+00> : vector<8x256xf32>
    %160 = tpu.matmul %158, %159, %cst_104 {dimension_numbers = #tpu.dot_dimension_numbers<[1], [0], [0], [1], [0, 0, 1, 1], [], []>} : vector<8x8xbf16>, vector<8x256xbf16>, vector<8x256xf32> -> vector<8x256xf32>
    %161 = arith.addf %151, %160 : vector<8x256xf32>
    %c241_i32_105 = arith.constant 241 : i32
    %162 = tpu.dynamic_rotate %105 by %c241_i32_105 dim 1 : vector<8x256xf32>, i32 -> vector<8x256xf32>
    %c6_106 = arith.constant 6 : index
    %c0_107 = arith.constant 0 : index
    %c0_108 = arith.constant 0 : index
    %163 = vector.load %arg4[%c6_106, %c0_107, %c0_108] : memref<9x1x256xf32, #tpu.memory_space<vmem>>, vector<1x1x256xf32>
    %164 = vector.shape_cast %163 : vector<1x1x256xf32> to vector<1x256xf32>
    %165 = vector.broadcast %164 : vector<1x256xf32> to vector<8x256xf32>
    %166 = arith.mulf %162, %165 : vector<8x256xf32>
    %c6_109 = arith.constant 6 : index
    %c0_110 = arith.constant 0 : index
    %c0_111 = arith.constant 0 : index
    %167 = vector.load %arg3[%c6_109, %c0_110, %c0_111] : memref<9x8x8xbf16, #tpu.memory_space<vmem>>, vector<1x8x8xbf16>
    %168 = vector.shape_cast %167 : vector<1x8x8xbf16> to vector<8x8xbf16>
    %169 = arith.truncf %166 : vector<8x256xf32> to vector<8x256xbf16>
    %cst_112 = arith.constant dense<0.000000e+00> : vector<8x256xf32>
    %170 = tpu.matmul %168, %169, %cst_112 {dimension_numbers = #tpu.dot_dimension_numbers<[1], [0], [0], [1], [0, 0, 1, 1], [], []>} : vector<8x8xbf16>, vector<8x256xbf16>, vector<8x256xf32> -> vector<8x256xf32>
    %171 = arith.addf %161, %170 : vector<8x256xf32>
    %c240_i32_113 = arith.constant 240 : i32
    %172 = tpu.dynamic_rotate %105 by %c240_i32_113 dim 1 : vector<8x256xf32>, i32 -> vector<8x256xf32>
    %c7_114 = arith.constant 7 : index
    %c0_115 = arith.constant 0 : index
    %c0_116 = arith.constant 0 : index
    %173 = vector.load %arg4[%c7_114, %c0_115, %c0_116] : memref<9x1x256xf32, #tpu.memory_space<vmem>>, vector<1x1x256xf32>
    %174 = vector.shape_cast %173 : vector<1x1x256xf32> to vector<1x256xf32>
    %175 = vector.broadcast %174 : vector<1x256xf32> to vector<8x256xf32>
    %176 = arith.mulf %172, %175 : vector<8x256xf32>
    %c7_117 = arith.constant 7 : index
    %c0_118 = arith.constant 0 : index
    %c0_119 = arith.constant 0 : index
    %177 = vector.load %arg3[%c7_117, %c0_118, %c0_119] : memref<9x8x8xbf16, #tpu.memory_space<vmem>>, vector<1x8x8xbf16>
    %178 = vector.shape_cast %177 : vector<1x8x8xbf16> to vector<8x8xbf16>
    %179 = arith.truncf %176 : vector<8x256xf32> to vector<8x256xbf16>
    %cst_120 = arith.constant dense<0.000000e+00> : vector<8x256xf32>
    %180 = tpu.matmul %178, %179, %cst_120 {dimension_numbers = #tpu.dot_dimension_numbers<[1], [0], [0], [1], [0, 0, 1, 1], [], []>} : vector<8x8xbf16>, vector<8x256xbf16>, vector<8x256xf32> -> vector<8x256xf32>
    %181 = arith.addf %171, %180 : vector<8x256xf32>
    %c239_i32_121 = arith.constant 239 : i32
    %182 = tpu.dynamic_rotate %105 by %c239_i32_121 dim 1 : vector<8x256xf32>, i32 -> vector<8x256xf32>
    %c8_122 = arith.constant 8 : index
    %c0_123 = arith.constant 0 : index
    %c0_124 = arith.constant 0 : index
    %183 = vector.load %arg4[%c8_122, %c0_123, %c0_124] : memref<9x1x256xf32, #tpu.memory_space<vmem>>, vector<1x1x256xf32>
    %184 = vector.shape_cast %183 : vector<1x1x256xf32> to vector<1x256xf32>
    %185 = vector.broadcast %184 : vector<1x256xf32> to vector<8x256xf32>
    %186 = arith.mulf %182, %185 : vector<8x256xf32>
    %c8_125 = arith.constant 8 : index
    %c0_126 = arith.constant 0 : index
    %c0_127 = arith.constant 0 : index
    %187 = vector.load %arg3[%c8_125, %c0_126, %c0_127] : memref<9x8x8xbf16, #tpu.memory_space<vmem>>, vector<1x8x8xbf16>
    %188 = vector.shape_cast %187 : vector<1x8x8xbf16> to vector<8x8xbf16>
    %189 = arith.truncf %186 : vector<8x256xf32> to vector<8x256xbf16>
    %cst_128 = arith.constant dense<0.000000e+00> : vector<8x256xf32>
    %190 = tpu.matmul %188, %189, %cst_128 {dimension_numbers = #tpu.dot_dimension_numbers<[1], [0], [0], [1], [0, 0, 1, 1], [], []>} : vector<8x8xbf16>, vector<8x256xbf16>, vector<8x256xf32> -> vector<8x256xf32>
    %191 = arith.addf %181, %190 : vector<8x256xf32>
    %cst_129 = arith.constant dense<0.000000e+00> : vector<8xf32>
    %192 = vector.multi_reduction <add>, %191, %cst_129 [1] : vector<8x256xf32> to vector<8xf32>
    %193 = vector.shape_cast %192 : vector<8xf32> to vector<8x1xf32>
    %cst_130 = arith.constant 3.906250e-03 : f32
    %194 = vector.broadcast %cst_130 : f32 to vector<8x1xf32>
    %195 = arith.mulf %193, %194 : vector<8x1xf32>
    %196 = vector.broadcast %195 : vector<8x1xf32> to vector<8x256xf32>
    %197 = arith.subf %191, %196 : vector<8x256xf32>
    %198 = arith.mulf %197, %197 : vector<8x256xf32>
    %cst_131 = arith.constant dense<0.000000e+00> : vector<8xf32>
    %199 = vector.multi_reduction <add>, %198, %cst_131 [1] : vector<8x256xf32> to vector<8xf32>
    %200 = vector.shape_cast %199 : vector<8xf32> to vector<8x1xf32>
    %cst_132 = arith.constant 3.906250e-03 : f32
    %201 = vector.broadcast %cst_132 : f32 to vector<8x1xf32>
    %202 = arith.mulf %200, %201 : vector<8x1xf32>
    %cst_133 = arith.constant 9.99999974E-6 : f32
    %203 = vector.broadcast %cst_133 : f32 to vector<8x1xf32>
    %204 = arith.addf %202, %203 : vector<8x1xf32>
    %205 = math.rsqrt %204 : vector<8x1xf32>
    %206 = vector.broadcast %205 : vector<8x1xf32> to vector<8x256xf32>
    %207 = arith.mulf %197, %206 : vector<8x256xf32>
    %208 = arith.addf %207, %1 : vector<8x256xf32>
    %c0_134 = arith.constant 0 : index
    %c0_135 = arith.constant 0 : index
    %c0_136 = arith.constant 0 : index
    %209 = vector.load %arg5[%c0_134, %c0_135, %c0_136] : memref<1x8x256xf32, #tpu.memory_space<vmem>>, vector<1x8x256xf32>
    %210 = vector.shape_cast %209 : vector<1x8x256xf32> to vector<8x256xf32>
    %211 = vector.shape_cast %208 : vector<8x256xf32> to vector<1x8x256xf32>
    tpu.vector_store %arg5[%c0_134, %c0_135, %c0_136], %211 {strides = array<i32>} : memref<1x8x256xf32, #tpu.memory_space<vmem>>, vector<1x8x256xf32>,
    return
  }
  func.func @transform_0(%arg0: i32) -> (i32, i32, i32) {
    %c0_i32 = arith.constant 0 : i32
    %c0_i32_0 = arith.constant 0 : i32
    %c0_i32_1 = arith.constant 0 : i32
    return %arg0, %c0_i32, %c0_i32_0 : i32, i32, i32
  }
  func.func @transform_1(%arg0: i32) -> (i32, i32, i32) {
    %c0_i32 = arith.constant 0 : i32
    %c0_i32_0 = arith.constant 0 : i32
    %c0_i32_1 = arith.constant 0 : i32
    %c0_i32_2 = arith.constant 0 : i32
    return %c0_i32, %c0_i32_0, %c0_i32_1 : i32, i32, i32
  }
  func.func @transform_2(%arg0: i32) -> (i32, i32, i32) {
    %c0_i32 = arith.constant 0 : i32
    %c0_i32_0 = arith.constant 0 : i32
    %c0_i32_1 = arith.constant 0 : i32
    %c0_i32_2 = arith.constant 0 : i32
    return %c0_i32, %c0_i32_0, %c0_i32_1 : i32, i32, i32
  }
  func.func @transform_3(%arg0: i32) -> (i32, i32, i32) {
    %c0_i32 = arith.constant 0 : i32
    %c0_i32_0 = arith.constant 0 : i32
    %c0_i32_1 = arith.constant 0 : i32
    %c0_i32_2 = arith.constant 0 : i32
    return %c0_i32, %c0_i32_0, %c0_i32_1 : i32, i32, i32
  }
  func.func @transform_4(%arg0: i32) -> (i32, i32, i32) {
    %c0_i32 = arith.constant 0 : i32
    %c0_i32_0 = arith.constant 0 : i32
    %c0_i32_1 = arith.constant 0 : i32
    return %arg0, %c0_i32, %c0_i32_0 : i32, i32, i32
  }
}

</mosaic_0001>

<bundles_post_ra>
// kernel: resblock_pallas.1
= control target key start
LH: loop header
LB: loop body
LE: loop exit
PB: predicated region body
PF: predicated region fallthrough
CT: control target
= control target key end

     0   :  { %s1368_s15 = smov 0   ;;  %s1770_s0 = inlined_call_operand.vmem [shape: f32[2,8,256], index: 0, kind: input, shape index: {}]   ;;  %s1771_s1 = inlined_call_operand.vmem [shape: bf16[9,8,8], index: 1, kind: input, shape index: {}]   ;;  %s1772_s2 = inlined_call_operand.vmem [shape: bf16[9,8,8], index: 2, kind: input, shape index: {}]   ;;  %s1773_s3 = inlined_call_operand.vmem [shape: f32[9,1,256], index: 3, kind: input, shape index: {}]   ;;  %s1774_s4 = inlined_call_operand.vmem [shape: f32[2,8,256], index: 4, kind: output, shape index: {}]  }
   0x1 LB: > { %s1235_s16 = sadd.s32 4294967295, %s1333_s15   ;;  %p1239_p0 = scmp.ge.s32.totalorder %s1333_s15, 1  ;;  %s1333_s15 = sphi %s1368_s15, %s14_s15  }
   0x2   : > { %p162_p1 = scmp.lt.s32.totalorder %s1333_s15, 3 }
   0x4   : > { %p163_p2 = pnand %p1239_p0, %p162_p1 }
   0x5   : > { %p188_p3 = scmp.lt.s32.totalorder (!%p163_p2), %s1235_s16, 1  ;;  %s1335_s21 = smov (!%p163_p2), 17  }
   0x6   : > { %166 = sbr.rel (%p163_p2) target bundleno = 1213 (0x4bd), region = 36  ;;  %s1336_s22 = smov (!%p163_p2), 16  }
   0x7   : > { %s1337_s23 = smov (!%p163_p2), 15   ;;  %s1338_s24 = smov (!%p163_p2), 1  }
   0x8   : > { %s1339_s25 = smov (!%p163_p2), 127   ;;  %s1340_s26 = smov (!%p163_p2), 113  }
   0x9   : > { %s1341_s27 = smov (!%p163_p2), 112   ;;  %s1342_s28 = smov (!%p163_p2), 111  }
   0xb   : > { %s1776_s16 = smov (!%p188_p3, %s1235_s16), 1  ;;  %v205_v3 = vlaneseq  ;;  %v1425_v5 = vld [vmem:[%s1773_s3 + $0x4] sm:$0x3]  ;;  %v1437_v13 = vld [vmem:[%s1773_s3 + $0x2] sm:$0x3]  ;;  %vm245_vm3 = vcmask 1043456  }
   0xc   : > { %s1305_s17 = sshll.u32 %s1776_s16, 4  ;;  %v323_v9 = vperm.slane %v1425_v5, 0  ;;  %v324_v10 = vperm.slane %v1425_v5, 1  ;;  %v1442_v14 = vld [vmem:[%s1773_s3] sm:$0x3]  ;;  %v231_v17 = vperm.slane %v1437_v13, 0 }
   0xd   : > { %s192_s20 = scalar_lea.vmem %s1770_s0, %s1305_s17  ;;  %v1420_v4 = vand.u32 127, %v205_v3  ;;  %v232_v18 = vperm.slane %v1437_v13, 1  ;;  %v212_v19 = vperm.slane %v1442_v14, 0  ;;  %v213_v20 = vperm.slane %v1442_v14, 1  ;;  %v1457_v25 = vld [vmem:[%s1773_s3 + $0x6] sm:$0x3]  ;;  %s197_s30 = scalar_lea.vmem %s1774_s4, %s1305_s17 }
   0xe   : > { %v1384_v0 = vld [vmem:[%s192_s20] sm:$0xff]  ;;  %v1392_v1 = vld [vmem:[%s192_s20 + $0x8] sm:$0xff]  ;;  %v380_v34 = vperm.slane %v1457_v25, 0  ;;  %v381_v35 = vperm.slane %v1457_v25, 1  ;;  %vm241_vm5 = vcmask 64512  }
   0xf   : > { %201 = vrot.lane.b32.xlu1 %v1384_v0, %s1335_s21  ;;  %221 = vrot.lane.b32.xlu0 %v1384_v0, %s1336_s22  ;;  %vm317_vm0 = vcmp.lt.s32.totalorder %v1420_v4, 15  ;;  %vm207_vm1 = vcmp.lt.s32.totalorder %v1420_v4, 17  ;;  %vm225_vm2 = vcmp.lt.s32.totalorder %v1420_v4, 16  ;;  %vm374_vm4 = vcmp.lt.s32.totalorder %v1420_v4, 1  ;;  %v1245_v49 = vld [vmem:[%s1771_s1 + $0x4] sm:$0xf] }
  0x10   : > { %313 = vrot.lane.b32.xlu2 %v1384_v0, %s1337_s23  ;;  %v429_v42 = vpack.c.bf16 %v1384_v0, %v1384_v0  ;;  %v430_v43 = vpack.c.bf16 %v1392_v1, %v1392_v1  ;;  %v218_v50 = vld [vmem:[%s1771_s1] sm:$0xf]  ;;  %v1509_v59 = vld [vmem:[%s1773_s3 + $0xa] sm:$0x3]  ;;  %v1516_v60 = vld [vmem:[%s1773_s3 + $0xc] sm:$0x3] }
  0x11   : > { %vm472_vm6 = vcmp.lt.s32.totalorder %v1420_v4, 127  ;;  %v478_v63 = vperm.slane %v1509_v59, 0  ;;  %vm529_vm7 = vcmp.lt.s32.totalorder %v1420_v4, 113  ;;  %vm586_vm8 = vcmp.lt.s32.totalorder %v1420_v4, 112  ;;  %v1288_v25 = vld [vmem:[%s1772_s2 + $0x10] sm:$0xf] }
  0x12   : > { %v435_v55 = vsel %vm245_vm3, %v429_v42, 0  ;;  %v438_v56 = vsel %vm245_vm3, %v430_v43, 0  ;;  %vm643_vm9 = vcmp.lt.s32.totalorder %v1420_v4, 111  ;;  %v1300_v4 = vld [vmem:[%s1772_s2 + $0x20] sm:$0xf] }
  0x17   : > { %203 = vrot.lane.b32.xlu1 %v1392_v1, %s1335_s21  ;;  %223 = vrot.lane.b32.xlu0 %v1392_v1, %s1336_s22 }
  0x18   : > { %315 = vrot.lane.b32.xlu2 %v1392_v1, %s1337_s23 }
  0x1f   : > { %372 = vrot.lane.b32.xlu1 %v1392_v1, %s1338_s24  ;;  %370 = vrot.lane.b32.xlu0 %v1384_v0, %s1338_s24 }
  0x20   : > { %468 = vrot.lane.b32.xlu2 %v1384_v0, %s1339_s25 }
  0x27   : > { %470 = vrot.lane.b32.xlu0 %v1392_v1, %s1339_s25  ;;  %525 = vrot.lane.b32.xlu1 %v1384_v0, %s1340_s26 }
  0x28   : > { %527 = vrot.lane.b32.xlu2 %v1392_v1, %s1340_s26 }
  0x2f   : > { %584 = vrot.lane.b32.xlu1 %v1392_v1, %s1341_s27  ;;  %582 = vrot.lane.b32.xlu0 %v1384_v0, %s1341_s27 }
  0x30   : > { %639 = vrot.lane.b32.xlu2 %v1384_v0, %s1342_s28 }
  0x37   : > { %641 = vrot.lane.b32.xlu0 %v1392_v1, %s1342_s28 }
  0x6a   : > { %v314_v2 = vpop.permute.xlu2 %313 }
  0x72   : > { %v316_v6 = vpop.permute.xlu2 %315 }
  0x73   : > { %v318_v11 = vsel %vm317_vm0, %v314_v2, %v316_v6  ;;  %v319_v12 = vsel %vm317_vm0, %v316_v6, %v314_v2  ;;  %v479_v2 = vperm.slane %v1509_v59, 1 }
  0x74   : > { %v327_v15 = vmul.f32 %v323_v9, %v319_v12  ;;  %v328_v16 = vmul.f32 %v324_v10, %v318_v11 }
  0x76   : > { %v331_v23 = vpack.c.bf16 %v327_v15, %v327_v15  ;;  %v332_v24 = vpack.c.bf16 %v328_v16, %v328_v16 }
  0x78   : > { %v337_v40 = vsel %vm245_vm3, %v331_v23, 0  ;;  %v340_v41 = vsel %vm245_vm3, %v332_v24, 0 }
  0x7a   : > { %v469_v48 = vpop.permute.xlu2 %468 }
  0x81   : > { %v202_v7 = vpop.permute.xlu1 %201  ;;  %v222_v8 = vpop.permute.xlu0 %221 }
  0x82   : > { %v528_v11 = vpop.permute.xlu2 %527 }
  0x89   : > { %v204_v21 = vpop.permute.xlu1 %203  ;;  %v224_v22 = vpop.permute.xlu0 %223 }
  0x8a   : > { %v208_v26 = vsel %vm207_vm1, %v202_v7, %v204_v21  ;;  %v209_v27 = vsel %vm207_vm1, %v204_v21, %v202_v7  ;;  %v226_v28 = vsel %vm225_vm2, %v222_v8, %v224_v22  ;;  %v227_v29 = vsel %vm225_vm2, %v224_v22, %v222_v8 }
  0x8b   : > { %v235_v30 = vmul.f32 %v231_v17, %v227_v29  ;;  %v236_v31 = vmul.f32 %v232_v18, %v226_v28  ;;  %v216_v32 = vmul.f32 %v212_v19, %v209_v27  ;;  %v217_v33 = vmul.f32 %v213_v20, %v208_v26  ;;  %v1545_v29 = vld [vmem:[%s1773_s3 + $0xe] sm:$0x3] }
  0x8c   : > { %v535_v7 = vperm.slane %v1516_v60, 0  ;;  %v536_v8 = vperm.slane %v1516_v60, 1 }
  0x8d   : > { %v239_v36 = vpack.c.bf16 %v235_v30, %v235_v30  ;;  %v240_v37 = vpack.c.bf16 %v236_v31, %v236_v31  ;;  %v219_v38 = vpack.c.bf16 %v216_v32, %v216_v32  ;;  %v220_v39 = vpack.c.bf16 %v217_v33, %v217_v33 }
  0x8f   : > { %v247_v44 = vsel %vm245_vm3, %v239_v36, 0  ;;  %v250_v45 = vsel %vm245_vm3, %v240_v37, 0  ;;  %v282_v46 = vsel %vm245_vm3, %v219_v38, 0  ;;  %v285_v47 = vsel %vm245_vm3, %v220_v39, 0 }
  0x90   : > { %259 = vmatpush.bf16.msra.mxu0 %v247_v44  ;;  %272 = vmatpush.bf16.msra.mxu1 %v250_v45  ;;  %v592_v38 = vperm.slane %v1545_v29, 0  ;;  %v593_v39 = vperm.slane %v1545_v29, 1  ;;  %v1297_v29 = vld [vmem:[%s1772_s2 + $0x1c] sm:$0xf] }
  0x91   : > { %294 = vmatpush.bf16.msra.mxu2 %v282_v46  ;;  %307 = vmatpush.bf16.msra.mxu3 %v285_v47  ;;  %v373_v51 = vpop.permute.xlu1 %372  ;;  %v371_v52 = vpop.permute.xlu0 %370 }
  0x92   : > { %v375_v53 = vsel %vm374_vm4, %v371_v52, %v373_v51  ;;  %v376_v54 = vsel %vm374_vm4, %v373_v51, %v371_v52 }
  0x93   : > { %1246 = vmatmul.msk.bf16.vlgmr.msra.gmra.mxu0 %vm241_vm5, %v1245_v49  ;;  %1247 = vmatmul.msk.bf16.vlgmr.msra.gmra.mxu1 %vm241_vm5, %v1245_v49  ;;  %v384_v57 = vmul.f32 %v380_v34, %v376_v54  ;;  %v385_v58 = vmul.f32 %v381_v35, %v375_v53 }
  0x94   : > { %349 = vmatpush.bf16.msrb.mxu0 %v337_v40  ;;  %362 = vmatpush.bf16.msrb.mxu1 %v340_v41  ;;  %v1251_v40 = vld [vmem:[%s1771_s1 + $0x8] sm:$0xf]  ;;  %v1255_v41 = vld [vmem:[%s1771_s1 + $0xc] sm:$0xf] }
  0x95   : > { %1248 = vmatmul.msk.bf16.vlgmr.msra.gmra.mxu2 %vm241_vm5, %v218_v50  ;;  %1249 = vmatmul.msk.bf16.vlgmr.msra.gmra.mxu3 %vm241_vm5, %v218_v50  ;;  %v388_v61 = vpack.c.bf16 %v384_v57, %v384_v57  ;;  %v389_v62 = vpack.c.bf16 %v385_v58, %v385_v58  ;;  %v1575_v50 = vld [vmem:[%s1773_s3 + $0x10] sm:$0x3] }
  0x96   : > { %v650_v57 = vperm.slane %v1575_v50, 1 }
  0x97   : > { %v394_v3 = vsel %vm245_vm3, %v388_v61, 0  ;;  %v397_v6 = vsel %vm245_vm3, %v389_v62, 0 }
  0x98   : > { %447 = vmatpush.bf16.msra.mxu0 %v435_v55  ;;  %460 = vmatpush.bf16.msra.mxu1 %v438_v56  ;;  %v640_v55 = vpop.permute.xlu2 %639  ;;  %v649_v56 = vperm.slane %v1575_v50, 0 }
  0x99   : > { %406 = vmatpush.bf16.msrb.mxu2 %v394_v3  ;;  %419 = vmatpush.bf16.msrb.mxu3 %v397_v6  ;;  %v471_v12 = vpop.permute.xlu0 %470  ;;  %v526_v15 = vpop.permute.xlu1 %525 }
  0x9a   : > { %v473_v16 = vsel %vm472_vm6, %v469_v48, %v471_v12  ;;  %v474_v21 = vsel %vm472_vm6, %v471_v12, %v469_v48  ;;  %v530_v22 = vsel %vm529_vm7, %v526_v15, %v528_v11  ;;  %v531_v23 = vsel %vm529_vm7, %v528_v11, %v526_v15  ;;  %v1258_v15 = vld [vmem:[%s1771_s1 + $0x10] sm:$0xf] }
  0x9b   : > { %v482_v24 = vmul.f32 %v478_v63, %v473_v16  ;;  %v483_v26 = vmul.f32 %v479_v2, %v474_v21  ;;  %v539_v27 = vmul.f32 %v535_v7, %v530_v22  ;;  %v540_v28 = vmul.f32 %v536_v8, %v531_v23  ;;  %v1262_v16 = vld [vmem:[%s1771_s1 + $0x14] sm:$0xf]  ;;  %v1266_v23 = vld [vmem:[%s1771_s1 + $0x18] sm:$0xf] }
  0x9d   : > { %v486_v30 = vpack.c.bf16 %v482_v24, %v482_v24  ;;  %v487_v31 = vpack.c.bf16 %v483_v26, %v483_v26  ;;  %v543_v32 = vpack.c.bf16 %v539_v27, %v539_v27  ;;  %v544_v33 = vpack.c.bf16 %v540_v28, %v540_v28  ;;  %v1270_v24 = vld [vmem:[%s1771_s1 + $0x1c] sm:$0xf]  ;;  %v1274_v26 = vld [vmem:[%s1771_s1 + $0x20] sm:$0xf] }
  0x9f   : > { %v492_v36 = vsel %vm245_vm3, %v486_v30, 0  ;;  %v495_v37 = vsel %vm245_vm3, %v487_v31, 0  ;;  %v549_v46 = vsel %vm245_vm3, %v543_v32, 0  ;;  %v552_v47 = vsel %vm245_vm3, %v544_v33, 0 }
  0xa0   : > { %504 = vmatpush.bf16.msra.mxu2 %v492_v36  ;;  %517 = vmatpush.bf16.msra.mxu3 %v495_v37 }
  0xa1   : > { %v585_v42 = vpop.permute.xlu1 %584  ;;  %v583_v43 = vpop.permute.xlu0 %582 }
  0xa2   : > { %v587_v44 = vsel %vm586_vm8, %v583_v43, %v585_v42  ;;  %v588_v45 = vsel %vm586_vm8, %v585_v42, %v583_v43 }
  0xa3   : > { %1252 = vmatmul.msk.bf16.vlgmr.msrb.gmra.mxu0 %vm241_vm5, %v1251_v40  ;;  %1253 = vmatmul.msk.bf16.vlgmr.msrb.gmra.mxu1 %vm241_vm5, %v1251_v40  ;;  %v596_v48 = vmul.f32 %v592_v38, %v587_v44  ;;  %v597_v49 = vmul.f32 %v593_v39, %v588_v45 }
  0xa4   : > { %561 = vmatpush.bf16.msrb.mxu0 %v549_v46  ;;  %574 = vmatpush.bf16.msrb.mxu1 %v552_v47 }
  0xa5   : > { %1256 = vmatmul.msk.bf16.vlgmr.msrb.gmra.mxu2 %vm241_vm5, %v1255_v41  ;;  %1257 = vmatmul.msk.bf16.vlgmr.msrb.gmra.mxu3 %vm241_vm5, %v1255_v41  ;;  %v600_v51 = vpack.c.bf16 %v596_v48, %v596_v48  ;;  %v601_v52 = vpack.c.bf16 %v597_v49, %v597_v49 }
  0xa7   : > { %v606_v53 = vsel %vm245_vm3, %v600_v51, 0  ;;  %v609_v54 = vsel %vm245_vm3, %v601_v52, 0 }
  0xa8   : > { %618 = vmatpush.bf16.msrb.mxu2 %v606_v53  ;;  %631 = vmatpush.bf16.msrb.mxu3 %v609_v54 }
  0xa9   : > { %v642_v58 = vpop.permute.xlu0 %641 }
  0xaa   : > { %v644_v61 = vsel %vm643_vm9, %v640_v55, %v642_v58  ;;  %v645_v62 = vsel %vm643_vm9, %v642_v58, %v640_v55 }
  0xab   : > { %v653_v3 = vmul.f32 %v649_v56, %v644_v61  ;;  %v654_v6 = vmul.f32 %v650_v57, %v645_v62 }
  0xad   : > { %v657_v11 = vpack.c.bf16 %v653_v3, %v653_v3  ;;  %v658_v12 = vpack.c.bf16 %v654_v6, %v654_v6 }
  0xaf   : > { %v663_v21 = vsel %vm245_vm3, %v657_v11, 0  ;;  %v666_v22 = vsel %vm245_vm3, %v658_v12, 0 }
  0xb3   : > { %1259 = vmatmul.msk.bf16.vlgmr.msra.gmra.mxu0 %vm241_vm5, %v1258_v15  ;;  %1260 = vmatmul.msk.bf16.vlgmr.msra.gmra.mxu1 %vm241_vm5, %v1258_v15 }
  0xb4   : > { %675 = vmatpush.bf16.msra.mxu0 %v663_v21  ;;  %688 = vmatpush.bf16.msra.mxu1 %v666_v22 }
  0xb5   : > { %1263 = vmatmul.msk.bf16.vlgmr.msra.gmra.mxu2 %vm241_vm5, %v1262_v16  ;;  %1264 = vmatmul.msk.bf16.vlgmr.msra.gmra.mxu3 %vm241_vm5, %v1262_v16 }
  0xc3   : > { %1267 = vmatmul.msk.bf16.vlgmr.msrb.gmra.mxu0 %vm241_vm5, %v1266_v23  ;;  %1268 = vmatmul.msk.bf16.vlgmr.msrb.gmra.mxu1 %vm241_vm5, %v1266_v23 }
  0xc5   : > { %1271 = vmatmul.msk.bf16.vlgmr.msrb.gmra.mxu2 %vm241_vm5, %v1270_v24  ;;  %1272 = vmatmul.msk.bf16.vlgmr.msrb.gmra.mxu3 %vm241_vm5, %v1270_v24 }
  0xd3   : > { %1275 = vmatmul.msk.bf16.vlgmr.msra.gmra.mxu0 %vm241_vm5, %v1274_v26  ;;  %1276 = vmatmul.msk.bf16.vlgmr.msra.gmra.mxu1 %vm241_vm5, %v1274_v26 }
 0x110   : > { %v261_v27 = vpop.f32.mrf.mxu0  ;;  %v274_v28 = vpop.f32.mrf.mxu1 }
 0x118   : > { %v296_v30 = vpop.f32.mrf.mxu2  ;;  %v309_v31 = vpop.f32.mrf.mxu3 }
 0x119   : > { %v263_v32 = vpop.f32.mrf.mxu0  ;;  %v276_v33 = vpop.f32.mrf.mxu1  ;;  %v297_v3 = vadd.f32 %v296_v30, %v261_v27  ;;  %v310_v6 = vadd.f32 %v309_v31, %v274_v28 }
 0x120   : > { %v298_v36 = vpop.f32.mrf.mxu2  ;;  %v311_v37 = vpop.f32.mrf.mxu3 }
 0x121   : > { %v351_v40 = vpop.f32.mrf.mxu0  ;;  %v364_v41 = vpop.f32.mrf.mxu1 }
 0x122   : > { %v368_v11 = vadd.f32 %v351_v40, %v297_v3  ;;  %v369_v12 = vadd.f32 %v364_v41, %v310_v6 }
 0x128   : > { %v408_v42 = vpop.f32.mrf.mxu2  ;;  %v421_v43 = vpop.f32.mrf.mxu3 }
 0x129   : > { %v353_v44 = vpop.f32.mrf.mxu0  ;;  %v366_v45 = vpop.f32.mrf.mxu1  ;;  %v425_v15 = vadd.f32 %v408_v42, %v368_v11  ;;  %v426_v16 = vadd.f32 %v421_v43, %v369_v12 }
 0x130   : > { %v410_v46 = vpop.f32.mrf.mxu2  ;;  %v423_v47 = vpop.f32.mrf.mxu3 }
 0x131   : > { %v449_v48 = vpop.f32.mrf.mxu0  ;;  %v462_v49 = vpop.f32.mrf.mxu1 }
 0x132   : > { %v466_v26 = vadd.f32 %v449_v48, %v425_v15  ;;  %v467_v32 = vadd.f32 %v462_v49, %v426_v16 }
 0x138   : > { %v506_v51 = vpop.f32.mrf.mxu2  ;;  %v519_v52 = vpop.f32.mrf.mxu3 }
 0x139   : > { %v451_v53 = vpop.f32.mrf.mxu0  ;;  %v464_v54 = vpop.f32.mrf.mxu1  ;;  %v523_v33 = vadd.f32 %v506_v51, %v466_v26  ;;  %v524_v36 = vadd.f32 %v519_v52, %v467_v32 }
 0x140   : > { %v508_v55 = vpop.f32.mrf.mxu2  ;;  %v521_v58 = vpop.f32.mrf.mxu3 }
 0x141   : > { %v563_v61 = vpop.f32.mrf.mxu0  ;;  %v576_v62 = vpop.f32.mrf.mxu1 }
 0x142   : > { %v580_v37 = vadd.f32 %v563_v61, %v523_v33  ;;  %v581_v44 = vadd.f32 %v576_v62, %v524_v36 }
 0x148   : > { %v620_v21 = vpop.f32.mrf.mxu2  ;;  %v633_v22 = vpop.f32.mrf.mxu3 }
 0x149   : > { %v565_v23 = vpop.f32.mrf.mxu0  ;;  %v578_v24 = vpop.f32.mrf.mxu1  ;;  %v637_v45 = vadd.f32 %v620_v21, %v580_v37  ;;  %v638_v46 = vadd.f32 %v633_v22, %v581_v44 }
 0x150   : > { %v622_v47 = vpop.f32.mrf.mxu2  ;;  %v635_v53 = vpop.f32.mrf.mxu3 }
 0x151   : > { %v677_v27 = vpop.f32.mrf.mxu0  ;;  %v690_v28 = vpop.f32.mrf.mxu1 }
 0x152   : > { %v694_v30 = vadd.f32 %v677_v27, %v637_v45  ;;  %v695_v31 = vadd.f32 %v690_v28, %v638_v46  ;;  %v1277_v28 = vld [vmem:[%s1772_s2 + $0x4] sm:$0xf] }
 0x154   : > { %v696_v40 = vadd.f32 %v695_v31, %v694_v30 }
 0x156   : > { %697 = vadd.xlane.f32.xlu1 %v696_v40 }
 0x159   : > { %v679_v41 = vpop.f32.mrf.mxu0  ;;  %v692_v42 = vpop.f32.mrf.mxu1 }
 0x1c9   : > { %v698_v43 = vpop.xlane.xlu1 %697 }
 0x1ca   : > { %v699_v54 = vmul.f32 0.00390625, %v698_v43 }
 0x1cc   : > { %v700_v48 = vsub.f32 %v694_v30, %v699_v54  ;;  %v701_v49 = vsub.f32 %v695_v31, %v699_v54 }
 0x1ce   : > { %v702_v51 = vmul.f32 %v700_v48, %v700_v48  ;;  %v703_v52 = vmul.f32 %v701_v49, %v701_v49 }
 0x1d0   : > { %v704_v55 = vadd.f32 %v703_v52, %v702_v51 }
 0x1d2   : > { %705 = vadd.xlane.f32.xlu2 %v704_v55 }
 0x245   : > { %v706_v58 = vpop.xlane.xlu2 %705 }
 0x246   : > { %v707_v61 = vmul.f32 0.00390625, %v706_v58 }
 0x248   : > { %v708_v62 = vadd.f32 1e-05, %v707_v61 }
 0x24a   : > { %1323 = vrsqrt.f32 %v708_v62  ;;  %vm715_vm11 = vweird.f32 %v708_v62 }
 0x250   : > { %v1324_v3 = vpop.eup %1323 }
 0x251   : > { %v710_v6 = vmul.f32 %v1324_v3, %v708_v62  ;;  %vm716_vm10 = vweird.f32 %v1324_v3 }
 0x252   : > { %vm717_vm12 = vmor %vm715_vm11, %vm716_vm10 }
 0x253   : > { %v711_v11 = vmul.f32 %v1324_v3, %v710_v6 }
 0x255   : > { %v712_v12 = vmul.f32 0.5, %v711_v11 }
 0x257   : > { %v713_v15 = vsub.f32 1.5, %v712_v12 }
 0x259   : > { %v714_v16 = vmul.f32 %v1324_v3, %v713_v15 }
 0x25b   : > { %v718_v21 = vsel %vm717_vm12, %v1324_v3, %v714_v16 }
 0x25c   : > { %v719_v22 = vmul.f32 %v718_v21, %v700_v48  ;;  %v720_v23 = vmul.f32 %v718_v21, %v701_v49 }
 0x25e   : > { %v721_v24 = vmax.f32 %v719_v22, 0.0  ;;  %v722_v26 = vmax.f32 %v720_v23, 0.0  ;;  %v731_v23 = vld [vmem:[%s1772_s2] sm:$0xf] }
 0x260   : > { %725 = vrot.lane.b32.xlu2 %v722_v26, %s1335_s21  ;;  %865 = vrot.lane.b32.xlu1 %v721_v24, %s1338_s24  ;;  %v917_v43 = vpack.c.bf16 %v722_v26, %v722_v26  ;;  %v916_v54 = vpack.c.bf16 %v721_v24, %v721_v24 }
 0x261   : > { %734 = vrot.lane.b32.xlu0 %v721_v24, %s1336_s22 }
 0x262   : > { %v925_v55 = vsel %vm245_vm3, %v917_v43, 0  ;;  %v922_v58 = vsel %vm245_vm3, %v916_v54, 0 }
 0x268   : > { %955 = vrot.lane.b32.xlu2 %v721_v24, %s1339_s25  ;;  %957 = vrot.lane.b32.xlu1 %v722_v26, %s1339_s25 }
 0x269   : > { %736 = vrot.lane.b32.xlu0 %v722_v26, %s1336_s22 }
 0x270   : > { %1104 = vrot.lane.b32.xlu2 %v722_v26, %s1342_s28  ;;  %1053 = vrot.lane.b32.xlu1 %v721_v24, %s1341_s27 }
 0x271   : > { %816 = vrot.lane.b32.xlu0 %v721_v24, %s1337_s23 }
 0x279   : > { %818 = vrot.lane.b32.xlu0 %v722_v26, %s1337_s23 }
 0x281   : > { %723 = vrot.lane.b32.xlu0 %v721_v24, %s1335_s21 }
 0x289   : > { %867 = vrot.lane.b32.xlu0 %v722_v26, %s1338_s24 }
 0x291   : > { %1004 = vrot.lane.b32.xlu0 %v721_v24, %s1340_s26 }
 0x299   : > { %1006 = vrot.lane.b32.xlu0 %v722_v26, %s1340_s26 }
 0x2a1   : > { %1102 = vrot.lane.b32.xlu0 %v721_v24, %s1342_s28 }
 0x2a9   : > { %1055 = vrot.lane.b32.xlu0 %v722_v26, %s1341_s27 }
 0x2d3   : > { %v735_v32 = vpop.permute.xlu0 %734 }
 0x2db   : > { %v737_v33 = vpop.permute.xlu0 %736 }
 0x2dc   : > { %v738_v36 = vsel %vm225_vm2, %v735_v32, %v737_v33  ;;  %v739_v37 = vsel %vm225_vm2, %v737_v33, %v735_v32 }
 0x2dd   : > { %v740_v44 = vmul.f32 %v739_v37, %v231_v17  ;;  %v741_v45 = vmul.f32 %v738_v36, %v232_v18  ;;  %v866_v17 = vpop.permute.xlu1 %865  ;;  %v726_v18 = vpop.permute.xlu2 %725 }
 0x2df   : > { %v744_v46 = vpack.c.bf16 %v740_v44, %v740_v44  ;;  %v745_v47 = vpack.c.bf16 %v741_v45, %v741_v45 }
 0x2e1   : > { %v750_v53 = vsel %vm245_vm3, %v744_v46, 0  ;;  %v753_v27 = vsel %vm245_vm3, %v745_v47, 0  ;;  %v1285_v47 = vld [vmem:[%s1772_s2 + $0xc] sm:$0xf] }
 0x2e2   : > { %762 = vmatpush.bf16.msra.mxu2 %v750_v53  ;;  %775 = vmatpush.bf16.msra.mxu3 %v753_v27 }
 0x2e3   : > { %v817_v30 = vpop.permute.xlu0 %816 }
 0x2e5   : > { %1278 = vmatmul.msk.bf16.vlgmr.msra.gmra.mxu2 %vm241_vm5, %v1277_v28  ;;  %1279 = vmatmul.msk.bf16.vlgmr.msra.gmra.mxu3 %vm241_vm5, %v1277_v28  ;;  %v956_v11 = vpop.permute.xlu2 %955 }
 0x2eb   : > { %v819_v13 = vpop.permute.xlu0 %818 }
 0x2ec   : > { %v820_v31 = vsel %vm317_vm0, %v817_v30, %v819_v13  ;;  %v821_v40 = vsel %vm317_vm0, %v819_v13, %v817_v30 }
 0x2ed   : > { %v822_v41 = vmul.f32 %v821_v40, %v323_v9  ;;  %v823_v42 = vmul.f32 %v820_v31, %v324_v10  ;;  %v1282_v9 = vld [vmem:[%s1772_s2 + $0x8] sm:$0xf]  ;;  %v958_v10 = vpop.permute.xlu1 %957 }
 0x2ee   : > { %v959_v12 = vsel %vm472_vm6, %v956_v11, %v958_v10  ;;  %v960_v15 = vsel %vm472_vm6, %v958_v10, %v956_v11 }
 0x2ef   : > { %v826_v48 = vpack.c.bf16 %v822_v41, %v822_v41  ;;  %v827_v49 = vpack.c.bf16 %v823_v42, %v823_v42  ;;  %v961_v14 = vmul.f32 %v959_v12, %v478_v63  ;;  %v1294_v41 = vld [vmem:[%s1772_s2 + $0x18] sm:$0xf] }
 0x2f1   : > { %v832_v51 = vsel %vm245_vm3, %v826_v48, 0  ;;  %v835_v52 = vsel %vm245_vm3, %v827_v49, 0  ;;  %v965_v63 = vpack.c.bf16 %v961_v14, %v961_v14 }
 0x2f2   : > { %844 = vmatpush.bf16.msrb.mxu2 %v832_v51  ;;  %857 = vmatpush.bf16.msrb.mxu3 %v835_v52 }
 0x2f3   : > { %v724_v5 = vpop.permute.xlu0 %723  ;;  %v971_v46 = vsel %vm245_vm3, %v965_v63, 0 }
 0x2f4   : > { %v727_v61 = vsel %vm207_vm1, %v724_v5, %v726_v18  ;;  %v728_v62 = vsel %vm207_vm1, %v726_v18, %v724_v5 }
 0x2f5   : > { %v729_v3 = vmul.f32 %v728_v62, %v212_v19  ;;  %v730_v6 = vmul.f32 %v727_v61, %v213_v20  ;;  %1283 = vmatmul.msk.bf16.vlgmr.msrb.gmra.mxu2 %vm241_vm5, %v1282_v9  ;;  %1284 = vmatmul.msk.bf16.vlgmr.msrb.gmra.mxu3 %vm241_vm5, %v1282_v9  ;;  %v962_v20 = vmul.f32 %v960_v15, %v479_v2 }
 0x2f6   : > { %947 = vmatpush.bf16.msra.mxu3 %v925_v55  ;;  %934 = vmatpush.bf16.msra.mxu2 %v922_v58  ;;  %v1291_v55 = vld [vmem:[%s1772_s2 + $0x14] sm:$0xf] }
 0x2f7   : > { %v732_v16 = vpack.c.bf16 %v729_v3, %v729_v3  ;;  %v733_v21 = vpack.c.bf16 %v730_v6, %v730_v6  ;;  %v966_v2 = vpack.c.bf16 %v962_v20, %v962_v20 }
 0x2f9   : > { %v785_v22 = vsel %vm245_vm3, %v732_v16, 0  ;;  %v788_v19 = vsel %vm245_vm3, %v733_v21, 0 }
 0x2fa   : > { %797 = vmatpush.bf16.msrb.mxu0 %v785_v22  ;;  %810 = vmatpush.bf16.msrb.mxu1 %v788_v19 }
 0x2fb   : > { %v868_v24 = vpop.permute.xlu0 %867 }
 0x2fc   : > { %v869_v26 = vsel %vm374_vm4, %v866_v17, %v868_v24  ;;  %v870_v32 = vsel %vm374_vm4, %v868_v24, %v866_v17 }
 0x2fd   : > { %v871_v33 = vmul.f32 %v870_v32, %v380_v34  ;;  %v872_v59 = vmul.f32 %v869_v26, %v381_v35  ;;  %1280 = vmatmul.msk.bf16.vlgmr.msrb.gmra.mxu0 %vm241_vm5, %v731_v23  ;;  %1281 = vmatmul.msk.bf16.vlgmr.msrb.gmra.mxu1 %vm241_vm5, %v731_v23  ;;  %v974_v34 = vsel %vm245_vm3, %v966_v2, 0 }
 0x2ff   : > { %v875_v36 = vpack.c.bf16 %v871_v33, %v871_v33  ;;  %v876_v37 = vpack.c.bf16 %v872_v59, %v872_v59 }
 0x301   : > { %v881_v44 = vsel %vm245_vm3, %v875_v36, 0  ;;  %v884_v45 = vsel %vm245_vm3, %v876_v37, 0 }
 0x302   : > { %893 = vmatpush.bf16.msra.mxu0 %v881_v44  ;;  %906 = vmatpush.bf16.msra.mxu1 %v884_v45 }
 0x303   : > { %v1005_v35 = vpop.permute.xlu0 %1004 }
 0x305   : > { %1289 = vmatmul.msk.bf16.vlgmr.msra.gmra.mxu2 %vm241_vm5, %v1288_v25  ;;  %1290 = vmatmul.msk.bf16.vlgmr.msra.gmra.mxu3 %vm241_vm5, %v1288_v25 }
 0x306   : > { %983 = vmatpush.bf16.msrb.mxu0 %v971_v46  ;;  %996 = vmatpush.bf16.msrb.mxu1 %v974_v34 }
 0x30b   : > { %v1007_v53 = vpop.permute.xlu0 %1006 }
 0x30c   : > { %v1008_v27 = vsel %vm529_vm7, %v1005_v35, %v1007_v53  ;;  %v1009_v28 = vsel %vm529_vm7, %v1007_v53, %v1005_v35 }
 0x30d   : > { %v1010_v30 = vmul.f32 %v1008_v27, %v535_v7  ;;  %v1011_v17 = vmul.f32 %v1009_v28, %v536_v8  ;;  %1286 = vmatmul.msk.bf16.vlgmr.msra.gmra.mxu0 %vm241_vm5, %v1285_v47  ;;  %1287 = vmatmul.msk.bf16.vlgmr.msra.gmra.mxu1 %vm241_vm5, %v1285_v47  ;;  %v1105_v7 = vpop.permute.xlu2 %1104 }
 0x30f   : > { %v1014_v13 = vpack.c.bf16 %v1010_v30, %v1010_v30  ;;  %v1015_v18 = vpack.c.bf16 %v1011_v17, %v1011_v17 }
 0x311   : > { %v1020_v31 = vsel %vm245_vm3, %v1014_v13, 0  ;;  %v1023_v40 = vsel %vm245_vm3, %v1015_v18, 0 }
 0x312   : > { %1032 = vmatpush.bf16.msrb.mxu2 %v1020_v31  ;;  %1045 = vmatpush.bf16.msrb.mxu3 %v1023_v40 }
 0x313   : > { %v1103_v42 = vpop.permute.xlu0 %1102 }
 0x314   : > { %v1106_v60 = vsel %vm643_vm9, %v1103_v42, %v1105_v7  ;;  %v1107_v8 = vsel %vm643_vm9, %v1105_v7, %v1103_v42 }
 0x315   : > { %v1108_v43 = vmul.f32 %v1106_v60, %v649_v56  ;;  %v1109_v54 = vmul.f32 %v1107_v8, %v650_v57  ;;  %1295 = vmatmul.msk.bf16.vlgmr.msrb.gmra.mxu2 %vm241_vm5, %v1294_v41  ;;  %1296 = vmatmul.msk.bf16.vlgmr.msrb.gmra.mxu3 %vm241_vm5, %v1294_v41  ;;  %v1054_v56 = vpop.permute.xlu1 %1053 }
 0x317   : > { %v1112_v48 = vpack.c.bf16 %v1108_v43, %v1108_v43  ;;  %v1113_v49 = vpack.c.bf16 %v1109_v54, %v1109_v54 }
 0x319   : > { %v1118_v51 = vsel %vm245_vm3, %v1112_v48, 0  ;;  %v1121_v52 = vsel %vm245_vm3, %v1113_v49, 0 }
 0x31a   : > { %1130 = vmatpush.bf16.msra.mxu2 %v1118_v51  ;;  %1143 = vmatpush.bf16.msra.mxu3 %v1121_v52 }
 0x31b   : > { %v1056_v58 = vpop.permute.xlu0 %1055 }
 0x31c   : > { %v1057_v50 = vsel %vm586_vm8, %v1054_v56, %v1056_v58  ;;  %v1058_v57 = vsel %vm586_vm8, %v1056_v58, %v1054_v56 }
 0x31d   : > { %v1059_v9 = vmul.f32 %v1057_v50, %v592_v38  ;;  %v1060_v5 = vmul.f32 %v1058_v57, %v593_v39  ;;  %1292 = vmatmul.msk.bf16.vlgmr.msrb.gmra.mxu0 %vm241_vm5, %v1291_v55  ;;  %1293 = vmatmul.msk.bf16.vlgmr.msrb.gmra.mxu1 %vm241_vm5, %v1291_v55 }
 0x31f   : > { %v1063_v10 = vpack.c.bf16 %v1059_v9, %v1059_v9  ;;  %v1064_v61 = vpack.c.bf16 %v1060_v5, %v1060_v5 }
 0x321   : > { %v1069_v62 = vsel %vm245_vm3, %v1063_v10, 0  ;;  %v1072_v3 = vsel %vm245_vm3, %v1064_v61, 0 }
 0x322   : > { %1081 = vmatpush.bf16.msra.mxu0 %v1069_v62  ;;  %1094 = vmatpush.bf16.msra.mxu1 %v1072_v3 }
 0x325   : > { %1301 = vmatmul.msk.bf16.vlgmr.msra.gmra.mxu2 %vm241_vm5, %v1300_v4  ;;  %1302 = vmatmul.msk.bf16.vlgmr.msra.gmra.mxu3 %vm241_vm5, %v1300_v4 }
 0x32d   : > { %1298 = vmatmul.msk.bf16.vlgmr.msra.gmra.mxu0 %vm241_vm5, %v1297_v29  ;;  %1299 = vmatmul.msk.bf16.vlgmr.msra.gmra.mxu1 %vm241_vm5, %v1297_v29 }
 0x368   : > { %v764_v38 = vpop.f32.mrf.mxu2  ;;  %v777_v39 = vpop.f32.mrf.mxu3 }
 0x370   : > { %v766_v6 = vpop.f32.mrf.mxu2  ;;  %v779_v11 = vpop.f32.mrf.mxu3 }
 0x378   : > { %v846_v12 = vpop.f32.mrf.mxu2  ;;  %v859_v15 = vpop.f32.mrf.mxu3 }
 0x37a   : > { %v799_v16 = vpop.f32.mrf.mxu0  ;;  %v812_v21 = vpop.f32.mrf.mxu1 }
 0x37b   : > { %v800_v44 = vadd.f32 %v799_v16, %v764_v38  ;;  %v813_v45 = vadd.f32 %v812_v21, %v777_v39 }
 0x37d   : > { %v863_v25 = vadd.f32 %v846_v12, %v800_v44  ;;  %v864_v35 = vadd.f32 %v859_v15, %v813_v45 }
 0x380   : > { %v848_v22 = vpop.f32.mrf.mxu2  ;;  %v861_v19 = vpop.f32.mrf.mxu3 }
 0x382   : > { %v801_v14 = vpop.f32.mrf.mxu0  ;;  %v814_v20 = vpop.f32.mrf.mxu1 }
 0x388   : > { %v936_v23 = vpop.f32.mrf.mxu2  ;;  %v949_v24 = vpop.f32.mrf.mxu3 }
 0x38a   : > { %v895_v26 = vpop.f32.mrf.mxu0  ;;  %v908_v32 = vpop.f32.mrf.mxu1 }
 0x38b   : > { %v912_v47 = vadd.f32 %v895_v26, %v863_v25  ;;  %v913_v53 = vadd.f32 %v908_v32, %v864_v35 }
 0x38d   : > { %v953_v13 = vadd.f32 %v936_v23, %v912_v47  ;;  %v954_v18 = vadd.f32 %v949_v24, %v913_v53 }
 0x390   : > { %v938_v33 = vpop.f32.mrf.mxu2  ;;  %v951_v59 = vpop.f32.mrf.mxu3 }
 0x392   : > { %v897_v63 = vpop.f32.mrf.mxu0  ;;  %v910_v2 = vpop.f32.mrf.mxu1 }
 0x398   : > { %v1034_v36 = vpop.f32.mrf.mxu2  ;;  %v1047_v37 = vpop.f32.mrf.mxu3 }
 0x39a   : > { %v985_v46 = vpop.f32.mrf.mxu0  ;;  %v998_v34 = vpop.f32.mrf.mxu1 }
 0x39b   : > { %v1002_v31 = vadd.f32 %v985_v46, %v953_v13  ;;  %v1003_v40 = vadd.f32 %v998_v34, %v954_v18 }
 0x39d   : > { %v1051_v42 = vadd.f32 %v1034_v36, %v1002_v31  ;;  %v1052_v60 = vadd.f32 %v1047_v37, %v1003_v40 }
 0x3a0   : > { %v1036_v27 = vpop.f32.mrf.mxu2  ;;  %v1049_v28 = vpop.f32.mrf.mxu3 }
 0x3a2   : > { %v987_v30 = vpop.f32.mrf.mxu0  ;;  %v1000_v17 = vpop.f32.mrf.mxu1 }
 0x3a8   : > { %v1132_v41 = vpop.f32.mrf.mxu2  ;;  %v1145_v7 = vpop.f32.mrf.mxu3 }
 0x3aa   : > { %v1083_v8 = vpop.f32.mrf.mxu0  ;;  %v1096_v43 = vpop.f32.mrf.mxu1 }
 0x3ab   : > { %v1100_v54 = vadd.f32 %v1083_v8, %v1051_v42  ;;  %v1101_v48 = vadd.f32 %v1096_v43, %v1052_v60 }
 0x3ad   : > { %v1149_v49 = vadd.f32 %v1132_v41, %v1100_v54  ;;  %v1150_v51 = vadd.f32 %v1145_v7, %v1101_v48 }
 0x3af   : > { %v1151_v52 = vadd.f32 %v1150_v51, %v1149_v49 }
 0x3b0   : > { %v1134_v55 = vpop.f32.mrf.mxu2  ;;  %v1147_v56 = vpop.f32.mrf.mxu3 }
 0x3b1   : > { %1152 = vadd.xlane.f32.xlu2 %v1151_v52 }
 0x3b2   : > { %v1085_v58 = vpop.f32.mrf.mxu0  ;;  %v1098_v50 = vpop.f32.mrf.mxu1 }
 0x424   : > { %v1153_v57 = vpop.xlane.xlu2 %1152 }
 0x425   : > { %v1154_v9 = vmul.f32 0.00390625, %v1153_v57 }
 0x427   : > { %v1155_v5 = vsub.f32 %v1149_v49, %v1154_v9  ;;  %v1156_v10 = vsub.f32 %v1150_v51, %v1154_v9 }
 0x429   : > { %v1157_v61 = vmul.f32 %v1155_v5, %v1155_v5  ;;  %v1158_v62 = vmul.f32 %v1156_v10, %v1156_v10 }
 0x42b   : > { %v1159_v3 = vadd.f32 %v1158_v62, %v1157_v61 }
 0x42d   : > { %1160 = vadd.xlane.f32.xlu1 %v1159_v3 }
 0x4a0   : > { %v1161_v4 = vpop.xlane.xlu1 %1160 }
 0x4a1   : > { %v1162_v29 = vmul.f32 0.00390625, %v1161_v4 }
 0x4a3   : > { %v1163_v38 = vadd.f32 1e-05, %v1162_v29 }
 0x4a5   : > { %1325 = vrsqrt.f32 %v1163_v38  ;;  %vm1170_vm14 = vweird.f32 %v1163_v38 }
 0x4ab   : > { %v1326_v39 = vpop.eup %1325 }
 0x4ac   : > { %v1165_v6 = vmul.f32 %v1326_v39, %v1163_v38  ;;  %vm1171_vm13 = vweird.f32 %v1326_v39 }
 0x4ad   : > { %vm1172_vm15 = vmor %vm1170_vm14, %vm1171_vm13 }
 0x4ae   : > { %v1166_v11 = vmul.f32 %v1326_v39, %v1165_v6 }
 0x4b0   : > { %v1167_v12 = vmul.f32 0.5, %v1166_v11 }
 0x4b2   : > { %v1168_v15 = vsub.f32 1.5, %v1167_v12 }
 0x4b4   : > { %v1169_v16 = vmul.f32 %v1326_v39, %v1168_v15 }
 0x4b6   : > { %v1173_v21 = vsel %vm1172_vm15, %v1326_v39, %v1169_v16 }
 0x4b7   : > { %v1174_v22 = vmul.f32 %v1173_v21, %v1155_v5  ;;  %v1175_v19 = vmul.f32 %v1173_v21, %v1156_v10 }
 0x4b9   : > { %v1176_v14 = vadd.f32 %v1174_v22, %v1384_v0  ;;  %v1177_v20 = vadd.f32 %v1175_v19, %v1392_v1 }
 0x4bb   : > { %1178 = vst [vmem:[%s197_s30] sm:$0xff] %v1176_v14 }
 0x4bc   : > { %1179 = vst [vmem:[%s197_s30 + $0x8] sm:$0xff] %v1177_v20 }
 0x4bd PF: > { %s14_s15 = sadd.s32 1, %s1333_s15  }
 0x4be   : > { %p11_p4 = scmp.ge.s32.totalorder %s14_s15, 4  }
 0x4c0   :  { %13 = sbr.rel (!%p11_p4) target bundleno = 1 (0x1), region = 89 }

</bundles_post_ra>
